<compile_context>
chip_gen: v7x
topology: tpu7x:2x2x1
jax: 0.10.0
libtpu: 0.0.40
codegen_flags: <defaults>
</compile_context>

<pallas_src>
import functools

import jax
import jax.numpy as jnp
from jax.experimental import pallas as pl
from jax.experimental.pallas import tpu as pltpu


def _round_up(x, m):
    return (x + m - 1) // m * m


def _actor_critic_kernel(x_ref, w1_ref, b1_ref, w2_ref, b2_ref, out_ref, *, num_actions):
    x = x_ref[...]

    # Fused layer 1: (TB, S) @ (S, 2H) -> (TB, 2H), bias + ReLU on one slab.
    h = jnp.dot(x, w1_ref[...], preferred_element_type=jnp.float32) + b1_ref[...]
    h = jnp.maximum(h, 0.0)

    # Fused layer 2 (block-diagonal, lane-padded weight): (TB, 2H) @ (2H, P).
    # Lanes [0, A) = actor logits, lane A = critic value, lanes (A, P) = pad.
    z = jnp.dot(h, w2_ref[...], preferred_element_type=jnp.float32) + b2_ref[...]

    # Numerically-stable softmax over the logit lanes only; the value lane
    # passes through untouched.  Whole-vreg ops, no lane slicing in-kernel.
    lane = jax.lax.broadcasted_iota(jnp.int32, z.shape, dimension=1)
    is_logit = lane < num_actions
    zm = jnp.where(is_logit, z, jnp.float32(-1e30))
    m = jnp.max(zm, axis=-1, keepdims=True)
    e = jnp.where(is_logit, jnp.exp(zm - m), 0.0)
    denom = jnp.sum(e, axis=-1, keepdims=True)
    probs = e / denom                         # exact normalization: rows sum to 1
    out_ref[...] = jnp.where(is_logit, probs, z)


def actor_critic_forward(x, fused, *, batch_tile=128):
    """x: (B, state_space) f32.  fused: dict from fuse_params().

    Returns (action_probs (B, A), state_values (B, 1))."""
    B, S = x.shape
    two_h = fused["w1"].shape[1]
    P = fused["w2"].shape[1]                  # lane-padded output width
    A = int(fused["num_actions"])

    # Batch tiling: multiple of 8 (f32 sublanes) that divides B, else full batch.
    TB = min(batch_tile, B)
    if B % TB != 0 or TB % 8 != 0:
        TB = B
    grid = (B // TB,)

    out = pl.pallas_call(
        functools.partial(_actor_critic_kernel, num_actions=A),
        out_shape=jax.ShapeDtypeStruct((B, P), jnp.float32),
        grid=grid,
        in_specs=[
            pl.BlockSpec((TB, S), lambda i: (i, 0)),            # x: tiled over batch
            pl.BlockSpec((S, two_h), lambda i: (0, 0)),         # fused W1 (VMEM-resident)
            pl.BlockSpec((1, two_h), lambda i: (0, 0)),         # fused b1
            pl.BlockSpec((two_h, P), lambda i: (0, 0)),         # block-diag, lane-padded W2
            pl.BlockSpec((1, P), lambda i: (0, 0)),             # fused b2
        ],
        out_specs=pl.BlockSpec((TB, P), lambda i: (i, 0)),      # lane-dense output slab
        compiler_params=pltpu.CompilerParams(
            dimension_semantics=("parallel",)),                 # megacore sharding
    )(x, fused["w1"], fused["b1"], fused["w2"], fused["b2"])

    return out[:, :A], out[:, A:A + 1]


def init_params(key, state_space, action_space, hidden_size):
    """Deterministic PyTorch-style (Kaiming-uniform-ish) init, stored (in, out)."""
    ks = jax.random.split(key, 8)

    def lin(kw, kb, fan_in, fan_out):
        bound = 1.0 / jnp.sqrt(jnp.float32(fan_in))
        w = jax.random.uniform(kw, (fan_in, fan_out), jnp.float32, -bound, bound)
        b = jax.random.uniform(kb, (1, fan_out), jnp.float32, -bound, bound)
        return w, b

    wa1, ba1 = lin(ks[0], ks[1], state_space, hidden_size)
    wa2, ba2 = lin(ks[2], ks[3], hidden_size, action_space)
    wc1, bc1 = lin(ks[4], ks[5], state_space, hidden_size)
    wc2, bc2 = lin(ks[6], ks[7], hidden_size, 1)
    return dict(wa1=wa1, ba1=ba1, wa2=wa2, ba2=ba2,
                wc1=wc1, bc1=bc1, wc2=wc2, bc2=bc2)


def fuse_params(p):
    """One-time fusion of actor/critic params for the fused kernel."""
    H = p["wa1"].shape[1]
    A = p["wa2"].shape[1]
    P = _round_up(A + 1, 128)                                   # lane-dense slab width

    w1 = jnp.concatenate([p["wa1"], p["wc1"]], axis=1)          # (S, 2H)
    b1 = jnp.concatenate([p["ba1"], p["bc1"]], axis=1)          # (1, 2H)

    w2 = jnp.zeros((2 * H, P), jnp.float32)                     # block-diag, padded
    w2 = w2.at[:H, :A].set(p["wa2"]).at[H:, A:A + 1].set(p["wc2"])
    b2 = jnp.zeros((1, P), jnp.float32)
    b2 = b2.at[:, :A].set(p["ba2"]).at[:, A:A + 1].set(p["bc2"])
    return dict(w1=w1, b1=b1, w2=w2, b2=b2, num_actions=A)


def reference_forward(x, p):
    """Pure-JAX reference (mirrors the PyTorch forward exactly)."""
    hp = jax.lax.Precision.HIGHEST
    h_a = jnp.maximum(jnp.dot(x, p["wa1"], precision=hp) + p["ba1"], 0.0)
    logits = jnp.dot(h_a, p["wa2"], precision=hp) + p["ba2"]
    probs = jax.nn.softmax(logits, axis=-1)
    h_c = jnp.maximum(jnp.dot(x, p["wc1"], precision=hp) + p["bc1"], 0.0)
    value = jnp.dot(h_c, p["wc2"], precision=hp) + p["bc2"]
    return probs, value


if __name__ == "__main__":
    # Small shapes consistent with ActorCritic(state_space, action_space, hidden).
    # B=64 with batch_tile=32 exercises the batched (parallel) grid.
    B, STATE, ACTION, HIDDEN = 64, 32, 16, 32

    key = jax.random.PRNGKey(0)
    k_x, k_p = jax.random.split(key)
    x = jax.random.normal(k_x, (B, STATE), dtype=jnp.float32)
    params = init_params(k_p, STATE, ACTION, HIDDEN)
    fused = fuse_params(params)

    probs, values = jax.block_until_ready(
        actor_critic_forward(x, fused, batch_tile=32))

    # Sanity-check against the pure-JAX reference.
    ref_probs, ref_values = reference_forward(x, params)
    assert probs.shape == (B, ACTION) and values.shape == (B, 1)
    assert jnp.allclose(probs, ref_probs, atol=2e-3, rtol=2e-3)
    assert jnp.allclose(values, ref_values, atol=2e-3, rtol=2e-3)
    # Exact in-kernel normalization -> rows sum to 1 to f32 precision.
    assert jnp.allclose(jnp.sum(probs, axis=-1), 1.0, atol=1e-3)

    print("KERNEL_OK")
</pallas_src>

<mosaic_0001>
module attributes {stable_mosaic.version = 11 : i64} {
  func.func @_actor_critic_kernel(%arg0: i32, %arg1: memref<32x32xf32, #tpu.memory_space<vmem>>, %arg2: memref<32x64xf32, #tpu.memory_space<vmem>>, %arg3: memref<1x64xf32, #tpu.memory_space<vmem>>, %arg4: memref<64x128xf32, #tpu.memory_space<vmem>>, %arg5: memref<1x128xf32, #tpu.memory_space<vmem>>, %arg6: memref<32x128xf32, #tpu.memory_space<vmem>>) attributes {dimension_semantics = [#tpu.dimension_semantics<parallel>], iteration_bounds = array<i64: 2>, scalar_prefetch = 0 : i64, scratch_operands = 0 : i64, tpu.core_type = #tpu.core_type<tc>, window_params = [{transform_indices = @transform_0, window_bounds = array<i64: 32, 32>}, {pipeline_mode = #tpu.pipeline_mode<synchronous>, transform_indices = @transform_1, window_bounds = array<i64: 32, 64>}, {pipeline_mode = #tpu.pipeline_mode<synchronous>, transform_indices = @transform_2, window_bounds = array<i64: 1, 64>}, {pipeline_mode = #tpu.pipeline_mode<synchronous>, transform_indices = @transform_3, window_bounds = array<i64: 64, 128>}, {pipeline_mode = #tpu.pipeline_mode<synchronous>, transform_indices = @transform_4, window_bounds = array<i64: 1, 128>}, {transform_indices = @transform_5, window_bounds = array<i64: 32, 128>}]} {
    %c0 = arith.constant 0 : index
    %c0_0 = arith.constant 0 : index
    %0 = vector.load %arg1[%c0, %c0_0] : memref<32x32xf32, #tpu.memory_space<vmem>>, vector<32x32xf32>
    %c0_1 = arith.constant 0 : index
    %c0_2 = arith.constant 0 : index
    %1 = vector.load %arg2[%c0_1, %c0_2] : memref<32x64xf32, #tpu.memory_space<vmem>>, vector<32x64xf32>
    %cst = arith.constant dense<0.000000e+00> : vector<32x64xf32>
    %2 = tpu.matmul %0, %1, %cst {dimension_numbers = #tpu.dot_dimension_numbers<[1], [0], [0], [1], [0, 0, 1, 1], [], []>} : vector<32x32xf32>, vector<32x64xf32>, vector<32x64xf32> -> vector<32x64xf32>
    %c0_3 = arith.constant 0 : index
    %c0_4 = arith.constant 0 : index
    %3 = vector.load %arg3[%c0_3, %c0_4] : memref<1x64xf32, #tpu.memory_space<vmem>>, vector<1x64xf32>
    %4 = vector.broadcast %3 : vector<1x64xf32> to vector<32x64xf32>
    %5 = arith.addf %2, %4 : vector<32x64xf32>
    %cst_5 = arith.constant 0.000000e+00 : f32
    %6 = vector.broadcast %cst_5 : f32 to vector<32x64xf32>
    %7 = arith.maximumf %5, %6 : vector<32x64xf32>
    %c0_6 = arith.constant 0 : index
    %c0_7 = arith.constant 0 : index
    %8 = vector.load %arg4[%c0_6, %c0_7] : memref<64x128xf32, #tpu.memory_space<vmem>>, vector<64x128xf32>
    %cst_8 = arith.constant dense<0.000000e+00> : vector<32x128xf32>
    %9 = tpu.matmul %7, %8, %cst_8 {dimension_numbers = #tpu.dot_dimension_numbers<[1], [0], [0], [1], [0, 0, 1, 1], [], []>} : vector<32x64xf32>, vector<64x128xf32>, vector<32x128xf32> -> vector<32x128xf32>
    %c0_9 = arith.constant 0 : index
    %c0_10 = arith.constant 0 : index
    %10 = vector.load %arg5[%c0_9, %c0_10] : memref<1x128xf32, #tpu.memory_space<vmem>>, vector<1x128xf32>
    %11 = vector.broadcast %10 : vector<1x128xf32> to vector<32x128xf32>
    %12 = arith.addf %9, %11 : vector<32x128xf32>
    %13 = tpu.iota {dimensions = array<i32: 1>} : vector<32x128xi32>
    %c16_i32 = arith.constant 16 : i32
    %14 = vector.broadcast %c16_i32 : i32 to vector<32x128xi32>
    %15 = arith.cmpi slt, %13, %14 : vector<32x128xi32>
    %cst_11 = arith.constant -1.000000e+30 : f32
    %16 = vector.broadcast %cst_11 : f32 to vector<32x128xf32>
    %17 = arith.select %15, %12, %16 : vector<32x128xi1>, vector<32x128xf32>
    %cst_12 = arith.constant dense<0xFF800000> : vector<32xf32>
    %18 = vector.multi_reduction <maximumf>, %17, %cst_12 [1] : vector<32x128xf32> to vector<32xf32>
    %19 = vector.shape_cast %18 : vector<32xf32> to vector<32x1xf32>
    %20 = vector.broadcast %19 : vector<32x1xf32> to vector<32x128xf32>
    %21 = arith.subf %17, %20 : vector<32x128xf32>
    %22 = math.exp %21 : vector<32x128xf32>
    %cst_13 = arith.constant 0.000000e+00 : f32
    %23 = vector.broadcast %cst_13 : f32 to vector<32x128xf32>
    %24 = arith.select %15, %22, %23 : vector<32x128xi1>, vector<32x128xf32>
    %cst_14 = arith.constant dense<0.000000e+00> : vector<32xf32>
    %25 = vector.multi_reduction <add>, %24, %cst_14 [1] : vector<32x128xf32> to vector<32xf32>
    %26 = vector.shape_cast %25 : vector<32xf32> to vector<32x1xf32>
    %27 = vector.broadcast %26 : vector<32x1xf32> to vector<32x128xf32>
    %28 = arith.divf %24, %27 : vector<32x128xf32>
    %29 = arith.select %15, %28, %12 : vector<32x128xi1>, vector<32x128xf32>
    %c0_15 = arith.constant 0 : index
    %c0_16 = arith.constant 0 : index
    %30 = vector.load %arg6[%c0_15, %c0_16] : memref<32x128xf32, #tpu.memory_space<vmem>>, vector<32x128xf32>
    tpu.vector_store %arg6[%c0_15, %c0_16], %29 {strides = array<i32>} : memref<32x128xf32, #tpu.memory_space<vmem>>, vector<32x128xf32>,
    return
  }
  func.func @transform_0(%arg0: i32) -> (i32, i32) {
    %c0_i32 = arith.constant 0 : i32
    %c0_i32_0 = arith.constant 0 : i32
    return %arg0, %c0_i32 : i32, i32
  }
  func.func @transform_1(%arg0: i32) -> (i32, i32) {
    %c0_i32 = arith.constant 0 : i32
    %c0_i32_0 = arith.constant 0 : i32
    %c0_i32_1 = arith.constant 0 : i32
    return %c0_i32, %c0_i32_0 : i32, i32
  }
  func.func @transform_2(%arg0: i32) -> (i32, i32) {
    %c0_i32 = arith.constant 0 : i32
    %c0_i32_0 = arith.constant 0 : i32
    %c0_i32_1 = arith.constant 0 : i32
    return %c0_i32, %c0_i32_0 : i32, i32
  }
  func.func @transform_3(%arg0: i32) -> (i32, i32) {
    %c0_i32 = arith.constant 0 : i32
    %c0_i32_0 = arith.constant 0 : i32
    %c0_i32_1 = arith.constant 0 : i32
    return %c0_i32, %c0_i32_0 : i32, i32
  }
  func.func @transform_4(%arg0: i32) -> (i32, i32) {
    %c0_i32 = arith.constant 0 : i32
    %c0_i32_0 = arith.constant 0 : i32
    %c0_i32_1 = arith.constant 0 : i32
    return %c0_i32, %c0_i32_0 : i32, i32
  }
  func.func @transform_5(%arg0: i32) -> (i32, i32) {
    %c0_i32 = arith.constant 0 : i32
    %c0_i32_0 = arith.constant 0 : i32
    return %arg0, %c0_i32 : i32, i32
  }
}

</mosaic_0001>

<bundles_post_ra>
// kernel: tpu_custom_call.1
= control target key start
LH: loop header
LB: loop body
LE: loop exit
PB: predicated region body
PF: predicated region fallthrough
CT: control target
= control target key end

     0   :  { %10 = vsyncpa [#allocation3], 0  ;;  %s1027_s0 = inlined_call_operand.vmem [shape: f32[64,32], index: 0, kind: input, shape index: {}]   ;;  %s1028_s1 = inlined_call_operand.vmem [shape: f32[32,64], index: 1, kind: input, shape index: {}]   ;;  %s1029_s2 = inlined_call_operand.vmem [shape: f32[1,64], index: 2, kind: input, shape index: {}]   ;;  %s1030_s3 = inlined_call_operand.vmem [shape: f32[64,128], index: 3, kind: input, shape index: {}]   ;;  %s1031_s4 = inlined_call_operand.vmem [shape: f32[1,128], index: 4, kind: input, shape index: {}]   ;;  %s1032_s5 = inlined_call_operand.hbm [shape: f32[64,128], index: 5, kind: output, shape index: {}]  }
   0x1   :  { %12 = vsyncpa [#allocation3 + $0x1], 0  ;;  %s844_s18 = smov 0   ;;  %s846_s19 = smov 0  }
   0x2   :  { %s848_s20 = smov 0   ;;  %s850_s21 = smov 0  }
   0x3 LB: > { %s865_s22 = sadd.s32 4294967295, %s809_s21   ;;  %s587_s23 = sadd.s32 4294967294, %s809_s21   ;;  %s809_s21 = sphi %s850_s21, %s1038_s21   ;;  %s805_s20 = sphi %s848_s20, %s1037_s20   ;;  %s801_s19 = sphi %s846_s19, %s1036_s19   ;;  %s797_s18 = sphi %s844_s18, %s1035_s18  }
   0x4   : > { %s869_s24 = sadd.s32 1, %s809_s21   ;;  %s135_s25 = sadd.s32 1, %s805_s20 }
   0x5   : > { %s132_s26 = ssub.s32 %s809_s21, %s869_s24  ;;  %p145_p0 = scmp.ne.s32.totalorder %s805_s20, %s801_s19 }
   0x6   : > { %p133_p1 = scmp.eq.s32.totalorder %s132_s26, 0  ;;  %p146_p2 = scmp.eq.s32.totalorder %s865_s22, 1 }
   0x7   : > { %p151_p3 = scmp.ne.s32.totalorder %s801_s19, %s797_s18  ;;  %p152_p4 = scmp.eq.s32.totalorder %s587_s23, 1 }
   0x8   : > { %s880_s27 = scalar_select %p133_p1, %s805_s20, %s135_s25  }
   0x9   : > { %p882_p5 = por %p146_p2, %p145_p0  ;;  %p886_p6 = por %p152_p4, %p151_p3 }
   0xa   : > { %p590_p7 = scmp.ge.s32.totalorder %s809_s21, 1  ;;  %p191_p8 = scmp.lt.s32.totalorder %s809_s21, 3 }
   0xc   : > { %p192_p9 = pnand %p590_p7, %p191_p8 }
   0xd   : > { %v230_v0 = vld [vmem:[%s1028_s1] sm:$0xff] (!%p192_p9)  ;;  %v231_v1 = vld [vmem:[%s1028_s1 + $0x8] sm:$0xff] (!%p192_p9)  ;;  %v232_v2 = vld [vmem:[%s1028_s1 + $0x10] sm:$0xff] (!%p192_p9)  ;;  %s592_s11 = sshll.u32 (!%p192_p9), %s865_s22, 2  ;;  %vm241_vm0 = vcmask (!%p192_p9), 261120   ;;  %vm358_vm1 = vcmask (!%p192_p9), 523264   ;;  %v456_v35 = vlaneseq (!%p192_p9) }
   0xe   : > { %195 = sbr.rel (%p192_p9) target bundleno = 798 (0x31e), region = 40  ;;  %v666_v3 = vpack.c.bf16 (!%p192_p9), %v231_v1, %v230_v0  ;;  %v233_v4 = vld [vmem:[%s1028_s1 + $0x18] sm:$0xff] (!%p192_p9)  ;;  %p220_p10 = scmp.lt.s32.totalorder (!%p192_p9), %s592_s11, 7  ;;  %v343_v5 = vld [vmem:[%s1030_s3] sm:$0xff] (!%p192_p9)  ;;  %v344_v6 = vld [vmem:[%s1030_s3 + $0x8] sm:$0xff] (!%p192_p9) }
   0xf   : > { %v670_v7 = vpack.c.bf16 (!%p192_p9), %v233_v4, %v232_v2  ;;  %v674_v8 = vpack.c.bf16 (!%p192_p9), %v344_v6, %v343_v5  ;;  %v345_v9 = vld [vmem:[%s1030_s3 + $0x10] sm:$0xff] (!%p192_p9)  ;;  %v346_v10 = vld [vmem:[%s1030_s3 + $0x18] sm:$0xff] (!%p192_p9)  ;;  %v347_v12 = vld [vmem:[%s1030_s3 + $0x20] sm:$0xff] (!%p192_p9)  ;;  %v939_v36 = vand.u32 (!%p192_p9), 127, %v456_v35  ;;  %s216_s6 = sand.u32 (!%p192_p9), 1, %s801_s19   ;;  %s609_s9 = sshll.u32 (!%p192_p9), %s865_s22, 9 }
  0x10   : > { %667 = vmatprep.subr.bf16.mxu0 (!%p192_p9), %v666_v3  ;;  %v678_v11 = vpack.c.bf16 (!%p192_p9), %v346_v10, %v345_v9  ;;  %v348_v13 = vld [vmem:[%s1030_s3 + $0x28] sm:$0xff] (!%p192_p9)  ;;  %v349_v19 = vld [vmem:[%s1030_s3 + $0x30] sm:$0xff] (!%p192_p9)  ;;  %v350_v20 = vld [vmem:[%s1030_s3 + $0x38] sm:$0xff] (!%p192_p9)  ;;  %s591_s7 = sshll.u32 (!%p192_p9), %s216_s6, 5  ;;  %s986_s22 = scalar_lea.sflag (!%p192_p9), [#allocation3], %s216_s6 }
  0x11   : > { %669 = vmatpush3.bf16.msra.mxu0 (!%p192_p9), %v666_v3  ;;  %675 = vmatprep.subr.bf16.mxu1 (!%p192_p9), %v674_v8  ;;  %v682_v14 = vpack.c.bf16 (!%p192_p9), %v348_v13, %v347_v12  ;;  %v686_v21 = vpack.c.bf16 (!%p192_p9), %v350_v20, %v349_v19  ;;  %v594_v22 = vld [vmem:[%s1029_s2] ss:$0 sm:$0xff] (!%p192_p9)  ;;  %vm458_vm2 = vcmp.lt.s32.totalorder (!%p192_p9), %v939_v36, 16  ;;  %s218_s8 = scalar_lea.vmem (!%p192_p9), [#allocation2], %s591_s7  ;;  %s811_s15 = smov (!%p192_p9), [#allocation2]  }
  0x12   : > { %671 = vmatprep.subr.bf16.mxu0 (!%p192_p9), %v670_v7  ;;  %677 = vmatpush3.bf16.msra.mxu1 (!%p192_p9), %v674_v8  ;;  %v599_v37 = vld [vmem:[%s1031_s4] ss:$0 sm:$0xff] (!%p192_p9)  ;;  %s751_s16 = sshll.u32 (!%p192_p9), %s811_s15, 4  ;;  %s752_s16 = int_to_ptr.vmem [resolvable:$false] %s751_s16 }
  0x13   : > { %679 = vmatprep.subr.bf16.mxu1 (!%p192_p9), %v678_v11  ;;  %s753_s17 = scalar_lea.vmem (!%p192_p9), %s752_s16, 1024 }
  0x15   : > { %s1040_s11 = smov (!%p220_p10, %s592_s11), 7  ;;  %673 = vmatpush3.bf16.msra.mxu0 %v670_v7 }
  0x16   : > { %s593_s10 = sshll.u32 %s1040_s11, 3  ;;  %681 = vmatpush3.bf16.msra.mxu1 %v678_v11 }
  0x17   : > { %s223_s14 = scalar_lea.vmem %s1027_s0, %s593_s10  ;;  %683 = vmatprep.subr.bf16.mxu1 %v682_v14  ;;  %s525_s10 = sshll.u32 %s218_s8, 4  ;;  %s981_s10 = int_to_ptr.vmem [resolvable:$true] %s525_s10 }
  0x18   : > { %v226_v15 = vld [vmem:[%s223_s14] sm:$0xff]  ;;  %v227_v16 = vld [vmem:[%s223_s14 + $0x8] sm:$0xff]  ;;  %v228_v17 = vld [vmem:[%s223_s14 + $0x10] sm:$0xff]  ;;  %s747_s11 = scalar_lea.vmem %s981_s10, 512  ;;  %p754_p0 = scmp.lt.s32.totalorder %s981_s10, %s752_s16 }
  0x19   : > { %638 = vmatprep.mubr.msk.f32.mxu0 %vm241_vm0, %v226_v15  ;;  %v229_v18 = vld [vmem:[%s223_s14 + $0x18] sm:$0xff]  ;;  %s979_s14 = scalar_lea.hbm %s1032_s5, %s609_s9  ;;  %p748_p11 = scmp.ne.s32.totalorder %s981_s10, %s747_s11 }
  0x1a   : > { %639 = vmatmul.mubr.msk.f32.vlgmr.msra.gmra.mrb[0].mxu0 %vm241_vm0, %v227_v16  ;;  %685 = vmatpush3.bf16.msra.mxu1 %v682_v14  ;;  %p755_p1 = scmp.lt.s32.totalorder %s753_s17, %s747_s11 }
  0x1b   : > { %641 = vmatprep.mubr.msk.f32.mxu0 %vm241_vm0, %v228_v17  ;;  %687 = vmatprep.subr.bf16.mxu1 %v686_v21  ;;  %p749_p12 = pnand %p748_p11, %p882_p5 }
  0x1c   : > { %p756_p2 = por %p755_p1, %p754_p0 }
  0x1d   : > { %p750_p13 = pneg %p749_p12 }
  0x1e   : > { %642 = vmatmul.mubr.msk.f32.gmra.mrb[2].mxu0 %vm241_vm0, %v229_v18  ;;  %689 = vmatpush3.bf16.msra.mxu1 %v686_v21 }
  0x1f   : > { %p757_p3 = pnand %p756_p2, %p750_p13 }
  0xed   : > { %v640_v23 = vpop.f32.mrb[0].mxu0 }
  0xee   : > { %v326_v24 = vadd.f32 %v640_v23, %v594_v22  ;;  %v320_v25 = vpop.f32.mrb[1].mxu0 }
  0xef   : > { %v321_v26 = vadd.f32 %v594_v22, %v320_v25 }
  0xf0   : > { %v340_v29 = vmax.f32 %v326_v24, 0.0 }
  0xf1   : > { %v339_v27 = vmax.f32 %v321_v26, 0.0  ;;  %v643_v28 = vpop.f32.mrb[2].mxu0 }
  0xf2   : > { %v336_v30 = vadd.f32 %v643_v28, %v594_v22  ;;  %v330_v31 = vpop.f32.mrb[3].mxu0 }
  0xf3   : > { %v331_v32 = vadd.f32 %v594_v22, %v330_v31  ;;  %660 = vmatprep.mubr.msk.f32.mxu1 %vm358_vm1, %v339_v27 }
  0xf4   : > { %661 = vmatmul.mubr.msk.f32.vlgmr.msra.gmra.mrb[0].mxu1 %vm358_vm1, %v340_v29  ;;  %v342_v34 = vmax.f32 %v336_v30, 0.0 }
  0xf5   : > { %v341_v33 = vmax.f32 %v331_v32, 0.0 }
  0xf7   : > { %663 = vmatprep.mubr.msk.f32.mxu1 %vm358_vm1, %v341_v33 }
  0xf8   : > { %664 = vmatmul.mubr.msk.f32.gmra.mrb[2].mxu1 %vm358_vm1, %v342_v34 }
 0x1c7   : > { %v662_v38 = vpop.f32.mrb[0].mxu1 }
 0x1c8   : > { %v437_v39 = vpop.f32.mrb[1].mxu1  ;;  %v945_v41 = vadd.f32 %v662_v38, %v599_v37 }
 0x1c9   : > { %v438_v40 = vadd.f32 %v599_v37, %v437_v39 }
 0x1ca   : > { %v460_v48 = vsel %vm458_vm2, %v945_v41, -1e+30 }
 0x1cb   : > { %v665_v42 = vpop.f32.mrb[2].mxu1  ;;  %v459_v43 = vsel %vm458_vm2, %v438_v40, -1e+30 }
 0x1cc   : > { %v447_v44 = vpop.f32.mrb[3].mxu1  ;;  %463 = vmax.xlane.f32.xlu0 %v459_v43  ;;  %v949_v46 = vadd.f32 %v665_v42, %v599_v37 }
 0x1cd   : > { %v448_v45 = vadd.f32 %v599_v37, %v447_v44 }
 0x1ce   : > { %v462_v49 = vsel %vm458_vm2, %v949_v46, -1e+30 }
 0x1cf   : > { %v461_v47 = vsel %vm458_vm2, %v448_v45, -1e+30 }
 0x1d0   : > { %467 = vmax.xlane.f32.xlu1 %v461_v47  ;;  %465 = vmax.xlane.f32.xlu0 %v460_v48 }
 0x1d4   : > { %469 = vmax.xlane.f32.xlu1 %v462_v49 }
 0x259   : > { %v464_v50 = vpop.xlane.xlu0 %463 }
 0x25a   : > { %v471_v51 = vsub.f32 %v459_v43, %v464_v50 }
 0x25c   : > { %v475_v52 = vmul.f32 1.442695, %v471_v51 }
 0x25d   : > { %v468_v53 = vpop.xlane.xlu1 %467  ;;  %v466_v54 = vpop.xlane.xlu0 %465 }
 0x25e   : > { %731 = vpow2.f32 %v475_v52  ;;  %v473_v55 = vsub.f32 %v461_v47, %v468_v53  ;;  %v472_v56 = vsub.f32 %v460_v48, %v466_v54 }
 0x260   : > { %v479_v57 = vmul.f32 1.442695, %v473_v55  ;;  %v477_v58 = vmul.f32 1.442695, %v472_v56 }
 0x261   : > { %v470_v59 = vpop.xlane.xlu1 %469 }
 0x262   : > { %733 = vpow2.f32 %v479_v57  ;;  %v474_v60 = vsub.f32 %v462_v49, %v470_v59 }
 0x263   : > { %735 = vpow2.f32 %v477_v58 }
 0x264   : > { %v481_v61 = vmul.f32 1.442695, %v474_v60 }
 0x266   : > { %737 = vpow2.f32 %v481_v61 }
 0x268   : > { %v732_v62 = vpop.eup %731 }
 0x269   : > { %v483_v63 = vsel %vm458_vm2, %v732_v62, 0.0 }
 0x26a   : > { %487 = vadd.xlane.f32.xlu0 %v483_v63 }
 0x26c   : > { %v734_v0 = vpop.eup %733 }
 0x26d   : > { %v736_v1 = vpop.eup %735  ;;  %v485_v2 = vsel %vm458_vm2, %v734_v0, 0.0 }
 0x26e   : > { %491 = vadd.xlane.f32.xlu0 %v485_v2  ;;  %v484_v3 = vsel %vm458_vm2, %v736_v1, 0.0 }
 0x26f   : > { %489 = vadd.xlane.f32.xlu1 %v484_v3 }
 0x270   : > { %v738_v4 = vpop.eup %737 }
 0x271   : > { %v486_v5 = vsel %vm458_vm2, %v738_v4, 0.0 }
 0x273   : > { %493 = vadd.xlane.f32.xlu1 %v486_v5 }
 0x2f7   : > { %v488_v6 = vpop.xlane.xlu0 %487 }
 0x2f8   : > { %739 = vrcp.f32 %v488_v6 }
 0x2fb   : > { %v492_v7 = vpop.xlane.xlu0 %491 }
 0x2fc   : > { %v490_v8 = vpop.xlane.xlu1 %489  ;;  %741 = vrcp.f32 %v492_v7 }
 0x2fd   : > { %743 = vrcp.f32 %v490_v8 }
 0x300   : > { %v494_v9 = vpop.xlane.xlu1 %493 }
 0x301   : > { %745 = vrcp.f32 %v494_v9 }
 0x302   : > { %v740_v10 = vpop.eup %739 }
 0x303   : > { %v496_v11 = vmul.f32 %v740_v10, %v483_v63 }
 0x305   : > { %v503_v12 = vsel %vm458_vm2, %v496_v11, %v438_v40 }
 0x306   : > { %v742_v13 = vpop.eup %741  ;;  %507 = vst [vmem:[%s218_s8] sm:$0xff] %v503_v12 }
 0x307   : > { %v744_v14 = vpop.eup %743  ;;  %v500_v15 = vmul.f32 %v742_v13, %v485_v2 }
 0x308   : > { %v498_v16 = vmul.f32 %v744_v14, %v484_v3 }
 0x309   : > { %v505_v17 = vsel %vm458_vm2, %v500_v15, %v448_v45 }
 0x30a   : > { %v504_v18 = vsel %vm458_vm2, %v498_v16, %v945_v41  ;;  %509 = vst [vmem:[%s218_s8 + $0x10] sm:$0xff] %v505_v17 }
 0x30b   : > { %v746_v19 = vpop.eup %745  ;;  %508 = vst [vmem:[%s218_s8 + $0x8] sm:$0xff] %v504_v18 }
 0x30c   : > { %v502_v20 = vmul.f32 %v746_v19, %v486_v5 }
 0x30e   : > { %v506_v21 = vsel %vm458_vm2, %v502_v20, %v949_v46 }
 0x30f   : > { %510 = vst [vmem:[%s218_s8 + $0x18] sm:$0xff] %v506_v21 }
 0x310   : > { %760 = shalt.err (!%p757_p3)
}
 0x311   : > { %s761_s23 = scalar_lea.hbm %s979_s14, 512  ;;  %s765_s30 = scalar_lea.hbm %s1032_s5, 1024 }
 0x312   : > { %p762_p4 = scmp.ne.s32.totalorder %s979_s14, %s761_s23  ;;  %p766_p9 = scmp.lt.u32.totalorder %s979_s14, %s1032_s5 }
 0x313   : > { %p767_p10 = scmp.lt.u32.totalorder %s765_s30, %s761_s23  ;;  %p769_p12 = scmp.lt.u32.totalorder %s761_s23, %s979_s14 }
 0x314   : > { %p763_p7 = pnand %p762_p4, %p882_p5 }
 0x315   : > { %p768_p11 = por %p767_p10, %p766_p9 }
 0x316   : > { %p764_p8 = pneg %p763_p7 }
 0x317   : > { %p770_p13 = por %p769_p12, %p768_p11 }
 0x319   : > { %p771_p0 = pnand %p770_p13, %p764_p8 }
 0x31b   : > { %774 = shalt.err (!%p771_p0)
}
 0x31c   : > { %s812_s8 = smov 128   ;;  %s813_s9 = smov 8  }
 0x31d   : > { %690 = dma.vmem_to_hbm [thread:$0]  (%p882_p5), %s981_s10, 512, %s979_s14, %s986_s22, %s812_s8, %s812_s8, %s813_s9  }
 0x31e PF: > { %p696_p1 = scmp.ge.s32.totalorder %s809_s21, 2  ;;  %s540_s12 = sand.u32 1, %s797_s18  }
 0x31f   : > { %s541_s13 = scalar_lea.sflag [#allocation3], %s540_s12 }
 0x320   : > { %p693_p2 = pnand %p696_p1, %p886_p6 }
 0x322   : > { %792 = dma.done.wait (!%p693_p2), %s541_s13, 512  }
 0x323   : > { %794 = vsyncadd (!%p693_p2), %s541_s13, 4294966784  ;;  %p15_p3 = scmp.ge.s32.totalorder %s869_s24, 4   ;;  %s1035_s18 = smov %s801_s19 }
 0x324   : > { %s1036_s19 = smov %s805_s20  ;;  %s1037_s20 = smov %s880_s27 }
 0x325   : > { %s1038_s21 = smov %s869_s24  ;;  %17 = sbr.rel (!%p15_p3) target bundleno = 3 (0x3), region = 75 }
 0x32c   :  { %546 = vsyncpa [#allocation3], 1 }
 0x32d   :  { %548 = vsyncpa [#allocation3 + $0x1], 1 }

</bundles_post_ra>
